<compile_context>
chip_gen: v5e
topology: v5e:2x2
jax: 0.10.0
libtpu: 0.0.40
codegen_flags: <defaults>
</compile_context>

<pallas_src>
import functools

import jax
import jax.numpy as jnp
from jax.experimental import pallas as pl
from jax.experimental.pallas import tpu as pltpu


SMOOTH = 0.01


def _round_up(x, m):
    return ((x + m - 1) // m) * m


def _vmem_capacity_bytes():
    try:
        return int(pltpu.get_tpu_info().vmem_capacity_bytes)
    except Exception:
        return 64 * 1024 * 1024  # conservative fallback (v7x per-TensorCore VMEM)


# Generation-aware scoped-VMEM ceiling: 3/4 of physical VMEM, capped.
#   v7x: 48 MiB of 64 MiB; v5e/v6e: 96 MiB of 128 MiB.
_VMEM_SAFE_LIMIT = min((_vmem_capacity_bytes() * 3) // 4, 96 * 1024 * 1024)


def _make_dice_kernel(C, TSUB, union_pad_correction):
    """Kernel specialized on (num classes, tile sublanes, padded-union correction)."""

    def kernel(x_ref, t_ref, out_ref, inter_ref, union_ref):
        # x_ref:  (1, C, TSUB, 128) logits (native dtype)
        # t_ref:  (1, TSUB, 128)    int8/int32 labels (padded pixels hold sentinel C)
        # out_ref:(1, 1, 1)         f32 per-batch dice partial
        # scratch: two (C, TSUB, 128) f32 streaming accumulators (inter / union)
        s = pl.program_id(1)

        @pl.when(s == 0)
        def _():
            inter_ref[...] = jnp.zeros_like(inter_ref)
            union_ref[...] = jnp.zeros_like(union_ref)

        # NOTE: elementwise math kept in f32 so the kernel is safe on v5e (no bf16
        #       VPU/EUP); on v6e/v7x with bf16 inputs the softmax could run in bf16.
        x = x_ref[0].astype(jnp.float32)      # (C, TSUB, 128)
        t = t_ref[0].astype(jnp.int32)        # (TSUB, 128)

        # Softmax over the class axis as elementwise VPU max/add across class planes.
        m = x[0]
        for c in range(1, C):
            m = jnp.maximum(m, x[c])
        e = [jnp.exp(x[c] - m) for c in range(C)]
        denom = e[0]
        for c in range(1, C):
            denom = denom + e[c]
        rinv = pl.reciprocal(denom, approx=True)          # (TSUB, 128)

        for c in range(C):
            p_c = e[c] * rinv                             # softmax prob of class c
            hit = t == c                                  # one-hot mask for class c
            inter_ref[c] += jnp.where(hit, p_c, 0.0)
            union_ref[c] += p_c + hit.astype(jnp.float32)  # fused sum(p) + sum(onehot)

        @pl.when(s == pl.num_programs(1) - 1)
        def _():
            inter = jnp.sum(jnp.sum(inter_ref[...], axis=2), axis=1, keepdims=True)
            union = jnp.sum(jnp.sum(union_ref[...], axis=2), axis=1, keepdims=True)
            inter = inter + SMOOTH                                    # (C, 1)
            union = union + (SMOOTH - union_pad_correction)           # (C, 1)
            out_ref[0] = jnp.sum(2.0 * inter / union, axis=0, keepdims=True)  # (1, 1)

    return kernel


@functools.partial(jax.jit, static_argnames=("max_lanes",))
def dice_in_combined_loss(logits, target, *, max_lanes=131072):
    """logits: (B, C, H, W) float, target: (B, H, W) int class ids.

    Returns the scalar loss 0.5 * (1 - sum_b sum_c 2*inter/union).
    """
    B, C, H, W = logits.shape
    S = H * W

    x_item = jnp.dtype(logits.dtype).itemsize
    # Narrow labels (sentinel value C must still be representable).
    label_dtype = jnp.int8 if C <= 127 else jnp.int32
    t_item = jnp.dtype(label_dtype).itemsize

    # --- spatial tile sizing (lanes == pixels), budgeted against scoped VMEM ---
    # per-pixel bytes: 2 pipeline buffers of logits + labels, 2 f32 accumulators, and
    # the live in-kernel f32 temporaries (x planes, exp planes, denom / p working).
    per_lane = 2 * C * x_item + 2 * t_item + 2 * C * 4 + (2 * C + 3) * 4
    budget = max(_VMEM_SAFE_LIMIT - 16 * 1024 * 1024, 16 * 1024 * 1024)
    lanes_cap = max(4096, min(budget // per_lane, max_lanes))
    tsub_cap = max(32, (lanes_cap // 128) // 32 * 32)   # tile size in rows of 128 px

    S128 = pl.cdiv(S, 128)                  # spatial rows of 128 pixels
    if S128 <= tsub_cap:
        num_s, TSUB = 1, S128               # single tile: full-dim block, no rounding
    else:
        num_s = pl.cdiv(S128, tsub_cap)
        TSUB = _round_up(pl.cdiv(S128, num_s), 32)  # 32 covers f32/bf16/int8 tiling
    S128_pad = num_s * TSUB
    S_tot = S128_pad * 128

    x = logits.reshape(B, C, S)             # bitcast-style reshape, no copy
    t = target.reshape(B, S).astype(label_dtype)
    if S_tot != S:
        # Padded pixels: logits 0 (uniform softmax), labels = sentinel C (one-hot all
        # zero).  Their 1/C-per-class contribution to the union is removed analytically
        # in the kernel finalize; no per-tile masking on the hot path.
        x = jnp.pad(x, ((0, 0), (0, 0), (0, S_tot - S)))
        t = jnp.pad(t, ((0, 0), (0, S_tot - S)), constant_values=C)
    x = x.reshape(B, C, S128_pad, 128)
    t = t.reshape(B, S128_pad, 128)

    union_pad_correction = float(S_tot - S) / float(C)

    tile_bytes = per_lane * TSUB * 128
    vmem_limit = int(min(_VMEM_SAFE_LIMIT,
                         max(32 * 1024 * 1024, tile_bytes + 16 * 1024 * 1024)))

    cost = pl.CostEstimate(
        flops=int(B * S_tot * (9 * C + 4)),
        transcendentals=int(B * S_tot * (C + 1)),
        bytes_accessed=int(B * C * S_tot * x_item + B * S_tot * t_item + B * 4),
    )

    # TODO(synk): on v7x with B == 1 the single "parallel" batch axis leaves one
    #             TensorCore idle; a wrapper-level 2-way spatial split would recover it.
    per_batch = pl.pallas_call(
        _make_dice_kernel(C, TSUB, union_pad_correction),
        out_shape=jax.ShapeDtypeStruct((B, 1, 1), jnp.float32),
        grid_spec=pltpu.PrefetchScalarGridSpec(
            num_scalar_prefetch=0,
            grid=(B, num_s),        # batch outer (parallel), spatial inner (reduction)
            in_specs=[
                pl.BlockSpec((1, C, TSUB, 128), lambda b, s: (b, 0, s, 0)),
                pl.BlockSpec((1, TSUB, 128), lambda b, s: (b, s, 0)),
            ],
            out_specs=pl.BlockSpec((1, 1, 1), lambda b, s: (b, 0, 0)),
            scratch_shapes=[
                pltpu.VMEM((C, TSUB, 128), jnp.float32),   # inter accumulator
                pltpu.VMEM((C, TSUB, 128), jnp.float32),   # union accumulator
            ],
        ),
        compiler_params=pltpu.CompilerParams(
            dimension_semantics=("parallel", "arbitrary"),
            vmem_limit_bytes=vmem_limit),
        cost_estimate=cost,
    )(x, t)

    dice_score = jnp.sum(per_batch)
    # TODO(synk): n_classes == 1 sigmoid branch of the PyTorch module is not
    #             implemented (this kernel covers the multi-class softmax path).
    # NOTE: the "dice score went too high" print in the reference module is a
    #       host-side debug print and does not affect the returned value.
    return 0.5 * (1.0 - dice_score)


def _reference(logits, target):
    B, C, H, W = logits.shape
    p = jax.nn.softmax(logits.astype(jnp.float32), axis=1).reshape(B, C, -1)
    oh = jax.nn.one_hot(target.reshape(B, -1), C, axis=1, dtype=jnp.float32)
    inter = jnp.sum(p * oh, axis=2) + SMOOTH
    union = jnp.sum(p, axis=2) + jnp.sum(oh, axis=2) + SMOOTH
    dice_score = jnp.sum(2.0 * inter / union)
    return 0.5 * (1.0 - dice_score)


if __name__ == "__main__":
    key = jax.random.PRNGKey(0)
    ks = jax.random.split(key, 8)

    # Case 1: canonical small shape (single spatial tile, S = 256, no padding).
    B, C, H, W = 2, 4, 16, 16
    logits = jax.random.normal(ks[0], (B, C, H, W), dtype=jnp.float32)
    target = jax.random.randint(ks[1], (B, H, W), 0, C, dtype=jnp.int32)
    out = jax.block_until_ready(dice_in_combined_loss(logits, target))
    ref = _reference(logits, target)
    assert jnp.allclose(out, ref, atol=5e-3, rtol=5e-3), (out, ref)

    # Case 2: ragged spatial size (S = 169 -> 87 sentinel-padded pixels, single tile).
    B2, C2, H2, W2 = 2, 3, 13, 13
    logits2 = jax.random.normal(ks[2], (B2, C2, H2, W2), dtype=jnp.float32)
    target2 = jax.random.randint(ks[3], (B2, H2, W2), 0, C2, dtype=jnp.int32)
    out2 = jax.block_until_ready(dice_in_combined_loss(logits2, target2))
    ref2 = _reference(logits2, target2)
    assert jnp.allclose(out2, ref2, atol=5e-3, rtol=5e-3), (out2, ref2)

    # Case 3: multi-tile spatial accumulation, exactly tiled
    # (S = 16384, max_lanes forced small -> 4 spatial tiles, no padding).
    B3, C3, H3, W3 = 2, 4, 128, 128
    logits3 = jax.random.normal(ks[4], (B3, C3, H3, W3), dtype=jnp.float32)
    target3 = jax.random.randint(ks[5], (B3, H3, W3), 0, C3, dtype=jnp.int32)
    out3 = jax.block_until_ready(dice_in_combined_loss(logits3, target3, max_lanes=4096))
    ref3 = _reference(logits3, target3)
    assert jnp.allclose(out3, ref3, atol=5e-3, rtol=5e-3), (out3, ref3)

    # Case 4: multi-tile + ragged tail (S = 10000 -> 3 spatial tiles with sentinel
    # padding and the analytic union correction).
    B4, C4, H4, W4 = 2, 5, 100, 100
    logits4 = jax.random.normal(ks[6], (B4, C4, H4, W4), dtype=jnp.float32)
    target4 = jax.random.randint(ks[7], (B4, H4, W4), 0, C4, dtype=jnp.int32)
    out4 = jax.block_until_ready(dice_in_combined_loss(logits4, target4, max_lanes=4096))
    ref4 = _reference(logits4, target4)
    assert jnp.allclose(out4, ref4, atol=5e-3, rtol=5e-3), (out4, ref4)

    print("KERNEL_OK")
</pallas_src>

<mosaic_0001>
module attributes {stable_mosaic.version = 11 : i64} {
  func.func @kernel(%arg0: i32, %arg1: i32, %arg2: memref<1x4x2x128xf32, #tpu.memory_space<vmem>>, %arg3: memref<1x2x128xi8, #tpu.memory_space<vmem>>, %arg4: memref<1x1x1xf32, #tpu.memory_space<vmem>>, %arg5: memref<4x2x128xf32, #tpu.memory_space<vmem>>, %arg6: memref<4x2x128xf32, #tpu.memory_space<vmem>>) attributes {dimension_semantics = [#tpu.dimension_semantics<parallel>, #tpu.dimension_semantics<arbitrary>], iteration_bounds = array<i64: 2, 1>, scalar_prefetch = 0 : i64, scratch_operands = 2 : i64, tpu.core_type = #tpu.core_type<tc>, window_params = [{transform_indices = @transform_0, window_bounds = array<i64: 1, 4, 2, 128>}, {transform_indices = @transform_1, window_bounds = array<i64: 1, 2, 128>}, {transform_indices = @transform_2, window_bounds = array<i64: 1, 1, 1>}]} {
    %c0_i32 = arith.constant 0 : i32
    %0 = arith.cmpi eq, %arg1, %c0_i32 : i32
    %1 = arith.extui %0 : i1 to i32
    %c0_i32_0 = arith.constant 0 : i32
    %2 = arith.cmpi ne, %1, %c0_i32_0 : i32
    scf.if %2 {
      %cst_58 = arith.constant 0.000000e+00 : f32
      %122 = vector.broadcast %cst_58 : f32 to vector<4x2x128xf32>
      %c0_59 = arith.constant 0 : index
      %c0_60 = arith.constant 0 : index
      %c0_61 = arith.constant 0 : index
      %123 = vector.load %arg5[%c0_59, %c0_60, %c0_61] : memref<4x2x128xf32, #tpu.memory_space<vmem>>, vector<4x2x128xf32>
      tpu.vector_store %arg5[%c0_59, %c0_60, %c0_61], %122 {strides = array<i32>} : memref<4x2x128xf32, #tpu.memory_space<vmem>>, vector<4x2x128xf32>,
      %cst_62 = arith.constant 0.000000e+00 : f32
      %124 = vector.broadcast %cst_62 : f32 to vector<4x2x128xf32>
      %c0_63 = arith.constant 0 : index
      %c0_64 = arith.constant 0 : index
      %c0_65 = arith.constant 0 : index
      %125 = vector.load %arg6[%c0_63, %c0_64, %c0_65] : memref<4x2x128xf32, #tpu.memory_space<vmem>>, vector<4x2x128xf32>
      tpu.vector_store %arg6[%c0_63, %c0_64, %c0_65], %124 {strides = array<i32>} : memref<4x2x128xf32, #tpu.memory_space<vmem>>, vector<4x2x128xf32>,
    } else {
    }
    %c0 = arith.constant 0 : index
    %c0_1 = arith.constant 0 : index
    %c0_2 = arith.constant 0 : index
    %c0_3 = arith.constant 0 : index
    %3 = vector.load %arg2[%c0, %c0_1, %c0_2, %c0_3] : memref<1x4x2x128xf32, #tpu.memory_space<vmem>>, vector<1x4x2x128xf32>
    %4 = vector.shape_cast %3 : vector<1x4x2x128xf32> to vector<4x2x128xf32>
    %c0_4 = arith.constant 0 : index
    %c0_5 = arith.constant 0 : index
    %c0_6 = arith.constant 0 : index
    %5 = vector.load %arg3[%c0_4, %c0_5, %c0_6] : memref<1x2x128xi8, #tpu.memory_space<vmem>>, vector<1x2x128xi8>
    %6 = vector.shape_cast %5 : vector<1x2x128xi8> to vector<2x128xi8>
    %7 = arith.extsi %6 : vector<2x128xi8> to vector<2x128xi32>
    %8 = vector.extract_strided_slice %4 {offsets = [0, 0, 0], sizes = [1, 2, 128], strides = [1, 1, 1]} : vector<4x2x128xf32> to vector<1x2x128xf32>
    %9 = vector.shape_cast %8 : vector<1x2x128xf32> to vector<2x128xf32>
    %10 = vector.extract_strided_slice %4 {offsets = [1, 0, 0], sizes = [1, 2, 128], strides = [1, 1, 1]} : vector<4x2x128xf32> to vector<1x2x128xf32>
    %11 = vector.shape_cast %10 : vector<1x2x128xf32> to vector<2x128xf32>
    %12 = arith.maximumf %9, %11 : vector<2x128xf32>
    %13 = vector.extract_strided_slice %4 {offsets = [2, 0, 0], sizes = [1, 2, 128], strides = [1, 1, 1]} : vector<4x2x128xf32> to vector<1x2x128xf32>
    %14 = vector.shape_cast %13 : vector<1x2x128xf32> to vector<2x128xf32>
    %15 = arith.maximumf %12, %14 : vector<2x128xf32>
    %16 = vector.extract_strided_slice %4 {offsets = [3, 0, 0], sizes = [1, 2, 128], strides = [1, 1, 1]} : vector<4x2x128xf32> to vector<1x2x128xf32>
    %17 = vector.shape_cast %16 : vector<1x2x128xf32> to vector<2x128xf32>
    %18 = arith.maximumf %15, %17 : vector<2x128xf32>
    %19 = vector.extract_strided_slice %4 {offsets = [0, 0, 0], sizes = [1, 2, 128], strides = [1, 1, 1]} : vector<4x2x128xf32> to vector<1x2x128xf32>
    %20 = vector.shape_cast %19 : vector<1x2x128xf32> to vector<2x128xf32>
    %21 = arith.subf %20, %18 : vector<2x128xf32>
    %22 = math.exp %21 : vector<2x128xf32>
    %23 = vector.extract_strided_slice %4 {offsets = [1, 0, 0], sizes = [1, 2, 128], strides = [1, 1, 1]} : vector<4x2x128xf32> to vector<1x2x128xf32>
    %24 = vector.shape_cast %23 : vector<1x2x128xf32> to vector<2x128xf32>
    %25 = arith.subf %24, %18 : vector<2x128xf32>
    %26 = math.exp %25 : vector<2x128xf32>
    %27 = vector.extract_strided_slice %4 {offsets = [2, 0, 0], sizes = [1, 2, 128], strides = [1, 1, 1]} : vector<4x2x128xf32> to vector<1x2x128xf32>
    %28 = vector.shape_cast %27 : vector<1x2x128xf32> to vector<2x128xf32>
    %29 = arith.subf %28, %18 : vector<2x128xf32>
    %30 = math.exp %29 : vector<2x128xf32>
    %31 = vector.extract_strided_slice %4 {offsets = [3, 0, 0], sizes = [1, 2, 128], strides = [1, 1, 1]} : vector<4x2x128xf32> to vector<1x2x128xf32>
    %32 = vector.shape_cast %31 : vector<1x2x128xf32> to vector<2x128xf32>
    %33 = arith.subf %32, %18 : vector<2x128xf32>
    %34 = math.exp %33 : vector<2x128xf32>
    %35 = arith.addf %22, %26 : vector<2x128xf32>
    %36 = arith.addf %35, %30 : vector<2x128xf32>
    %37 = arith.addf %36, %34 : vector<2x128xf32>
    %38 = tpu.reciprocal %37 {approx = true} : vector<2x128xf32> -> vector<2x128xf32>
    %39 = arith.mulf %22, %38 : vector<2x128xf32>
    %c0_i32_7 = arith.constant 0 : i32
    %40 = vector.broadcast %c0_i32_7 : i32 to vector<2x128xi32>
    %41 = arith.cmpi eq, %7, %40 : vector<2x128xi32>
    %c0_8 = arith.constant 0 : index
    %c0_9 = arith.constant 0 : index
    %c0_10 = arith.constant 0 : index
    %42 = vector.load %arg5[%c0_8, %c0_9, %c0_10] : memref<4x2x128xf32, #tpu.memory_space<vmem>>, vector<1x2x128xf32>
    %43 = vector.shape_cast %42 : vector<1x2x128xf32> to vector<2x128xf32>
    %cst = arith.constant 0.000000e+00 : f32
    %44 = vector.broadcast %cst : f32 to vector<2x128xf32>
    %45 = arith.select %41, %39, %44 : vector<2x128xi1>, vector<2x128xf32>
    %46 = arith.addf %43, %45 : vector<2x128xf32>
    %c0_11 = arith.constant 0 : index
    %c0_12 = arith.constant 0 : index
    %c0_13 = arith.constant 0 : index
    %47 = vector.load %arg5[%c0_11, %c0_12, %c0_13] : memref<4x2x128xf32, #tpu.memory_space<vmem>>, vector<1x2x128xf32>
    %48 = vector.shape_cast %47 : vector<1x2x128xf32> to vector<2x128xf32>
    %49 = vector.shape_cast %46 : vector<2x128xf32> to vector<1x2x128xf32>
    tpu.vector_store %arg5[%c0_11, %c0_12, %c0_13], %49 {strides = array<i32>} : memref<4x2x128xf32, #tpu.memory_space<vmem>>, vector<1x2x128xf32>,
    %c0_14 = arith.constant 0 : index
    %c0_15 = arith.constant 0 : index
    %c0_16 = arith.constant 0 : index
    %50 = vector.load %arg6[%c0_14, %c0_15, %c0_16] : memref<4x2x128xf32, #tpu.memory_space<vmem>>, vector<1x2x128xf32>
    %51 = vector.shape_cast %50 : vector<1x2x128xf32> to vector<2x128xf32>
    %52 = arith.extui %41 : vector<2x128xi1> to vector<2x128xi32>
    %53 = arith.sitofp %52 : vector<2x128xi32> to vector<2x128xf32>
    %54 = arith.addf %39, %53 : vector<2x128xf32>
    %55 = arith.addf %51, %54 : vector<2x128xf32>
    %c0_17 = arith.constant 0 : index
    %c0_18 = arith.constant 0 : index
    %c0_19 = arith.constant 0 : index
    %56 = vector.load %arg6[%c0_17, %c0_18, %c0_19] : memref<4x2x128xf32, #tpu.memory_space<vmem>>, vector<1x2x128xf32>
    %57 = vector.shape_cast %56 : vector<1x2x128xf32> to vector<2x128xf32>
    %58 = vector.shape_cast %55 : vector<2x128xf32> to vector<1x2x128xf32>
    tpu.vector_store %arg6[%c0_17, %c0_18, %c0_19], %58 {strides = array<i32>} : memref<4x2x128xf32, #tpu.memory_space<vmem>>, vector<1x2x128xf32>,
    %59 = arith.mulf %26, %38 : vector<2x128xf32>
    %c1_i32 = arith.constant 1 : i32
    %60 = vector.broadcast %c1_i32 : i32 to vector<2x128xi32>
    %61 = arith.cmpi eq, %7, %60 : vector<2x128xi32>
    %c1 = arith.constant 1 : index
    %c0_20 = arith.constant 0 : index
    %c0_21 = arith.constant 0 : index
    %62 = vector.load %arg5[%c1, %c0_20, %c0_21] : memref<4x2x128xf32, #tpu.memory_space<vmem>>, vector<1x2x128xf32>
    %63 = vector.shape_cast %62 : vector<1x2x128xf32> to vector<2x128xf32>
    %cst_22 = arith.constant 0.000000e+00 : f32
    %64 = vector.broadcast %cst_22 : f32 to vector<2x128xf32>
    %65 = arith.select %61, %59, %64 : vector<2x128xi1>, vector<2x128xf32>
    %66 = arith.addf %63, %65 : vector<2x128xf32>
    %c1_23 = arith.constant 1 : index
    %c0_24 = arith.constant 0 : index
    %c0_25 = arith.constant 0 : index
    %67 = vector.load %arg5[%c1_23, %c0_24, %c0_25] : memref<4x2x128xf32, #tpu.memory_space<vmem>>, vector<1x2x128xf32>
    %68 = vector.shape_cast %67 : vector<1x2x128xf32> to vector<2x128xf32>
    %69 = vector.shape_cast %66 : vector<2x128xf32> to vector<1x2x128xf32>
    tpu.vector_store %arg5[%c1_23, %c0_24, %c0_25], %69 {strides = array<i32>} : memref<4x2x128xf32, #tpu.memory_space<vmem>>, vector<1x2x128xf32>,
    %c1_26 = arith.constant 1 : index
    %c0_27 = arith.constant 0 : index
    %c0_28 = arith.constant 0 : index
    %70 = vector.load %arg6[%c1_26, %c0_27, %c0_28] : memref<4x2x128xf32, #tpu.memory_space<vmem>>, vector<1x2x128xf32>
    %71 = vector.shape_cast %70 : vector<1x2x128xf32> to vector<2x128xf32>
    %72 = arith.extui %61 : vector<2x128xi1> to vector<2x128xi32>
    %73 = arith.sitofp %72 : vector<2x128xi32> to vector<2x128xf32>
    %74 = arith.addf %59, %73 : vector<2x128xf32>
    %75 = arith.addf %71, %74 : vector<2x128xf32>
    %c1_29 = arith.constant 1 : index
    %c0_30 = arith.constant 0 : index
    %c0_31 = arith.constant 0 : index
    %76 = vector.load %arg6[%c1_29, %c0_30, %c0_31] : memref<4x2x128xf32, #tpu.memory_space<vmem>>, vector<1x2x128xf32>
    %77 = vector.shape_cast %76 : vector<1x2x128xf32> to vector<2x128xf32>
    %78 = vector.shape_cast %75 : vector<2x128xf32> to vector<1x2x128xf32>
    tpu.vector_store %arg6[%c1_29, %c0_30, %c0_31], %78 {strides = array<i32>} : memref<4x2x128xf32, #tpu.memory_space<vmem>>, vector<1x2x128xf32>,
    %79 = arith.mulf %30, %38 : vector<2x128xf32>
    %c2_i32 = arith.constant 2 : i32
    %80 = vector.broadcast %c2_i32 : i32 to vector<2x128xi32>
    %81 = arith.cmpi eq, %7, %80 : vector<2x128xi32>
    %c2 = arith.constant 2 : index
    %c0_32 = arith.constant 0 : index
    %c0_33 = arith.constant 0 : index
    %82 = vector.load %arg5[%c2, %c0_32, %c0_33] : memref<4x2x128xf32, #tpu.memory_space<vmem>>, vector<1x2x128xf32>
    %83 = vector.shape_cast %82 : vector<1x2x128xf32> to vector<2x128xf32>
    %cst_34 = arith.constant 0.000000e+00 : f32
    %84 = vector.broadcast %cst_34 : f32 to vector<2x128xf32>
    %85 = arith.select %81, %79, %84 : vector<2x128xi1>, vector<2x128xf32>
    %86 = arith.addf %83, %85 : vector<2x128xf32>
    %c2_35 = arith.constant 2 : index
    %c0_36 = arith.constant 0 : index
    %c0_37 = arith.constant 0 : index
    %87 = vector.load %arg5[%c2_35, %c0_36, %c0_37] : memref<4x2x128xf32, #tpu.memory_space<vmem>>, vector<1x2x128xf32>
    %88 = vector.shape_cast %87 : vector<1x2x128xf32> to vector<2x128xf32>
    %89 = vector.shape_cast %86 : vector<2x128xf32> to vector<1x2x128xf32>
    tpu.vector_store %arg5[%c2_35, %c0_36, %c0_37], %89 {strides = array<i32>} : memref<4x2x128xf32, #tpu.memory_space<vmem>>, vector<1x2x128xf32>,
    %c2_38 = arith.constant 2 : index
    %c0_39 = arith.constant 0 : index
    %c0_40 = arith.constant 0 : index
    %90 = vector.load %arg6[%c2_38, %c0_39, %c0_40] : memref<4x2x128xf32, #tpu.memory_space<vmem>>, vector<1x2x128xf32>
    %91 = vector.shape_cast %90 : vector<1x2x128xf32> to vector<2x128xf32>
    %92 = arith.extui %81 : vector<2x128xi1> to vector<2x128xi32>
    %93 = arith.sitofp %92 : vector<2x128xi32> to vector<2x128xf32>
    %94 = arith.addf %79, %93 : vector<2x128xf32>
    %95 = arith.addf %91, %94 : vector<2x128xf32>
    %c2_41 = arith.constant 2 : index
    %c0_42 = arith.constant 0 : index
    %c0_43 = arith.constant 0 : index
    %96 = vector.load %arg6[%c2_41, %c0_42, %c0_43] : memref<4x2x128xf32, #tpu.memory_space<vmem>>, vector<1x2x128xf32>
    %97 = vector.shape_cast %96 : vector<1x2x128xf32> to vector<2x128xf32>
    %98 = vector.shape_cast %95 : vector<2x128xf32> to vector<1x2x128xf32>
    tpu.vector_store %arg6[%c2_41, %c0_42, %c0_43], %98 {strides = array<i32>} : memref<4x2x128xf32, #tpu.memory_space<vmem>>, vector<1x2x128xf32>,
    %99 = arith.mulf %34, %38 : vector<2x128xf32>
    %c3_i32 = arith.constant 3 : i32
    %100 = vector.broadcast %c3_i32 : i32 to vector<2x128xi32>
    %101 = arith.cmpi eq, %7, %100 : vector<2x128xi32>
    %c3 = arith.constant 3 : index
    %c0_44 = arith.constant 0 : index
    %c0_45 = arith.constant 0 : index
    %102 = vector.load %arg5[%c3, %c0_44, %c0_45] : memref<4x2x128xf32, #tpu.memory_space<vmem>>, vector<1x2x128xf32>
    %103 = vector.shape_cast %102 : vector<1x2x128xf32> to vector<2x128xf32>
    %cst_46 = arith.constant 0.000000e+00 : f32
    %104 = vector.broadcast %cst_46 : f32 to vector<2x128xf32>
    %105 = arith.select %101, %99, %104 : vector<2x128xi1>, vector<2x128xf32>
    %106 = arith.addf %103, %105 : vector<2x128xf32>
    %c3_47 = arith.constant 3 : index
    %c0_48 = arith.constant 0 : index
    %c0_49 = arith.constant 0 : index
    %107 = vector.load %arg5[%c3_47, %c0_48, %c0_49] : memref<4x2x128xf32, #tpu.memory_space<vmem>>, vector<1x2x128xf32>
    %108 = vector.shape_cast %107 : vector<1x2x128xf32> to vector<2x128xf32>
    %109 = vector.shape_cast %106 : vector<2x128xf32> to vector<1x2x128xf32>
    tpu.vector_store %arg5[%c3_47, %c0_48, %c0_49], %109 {strides = array<i32>} : memref<4x2x128xf32, #tpu.memory_space<vmem>>, vector<1x2x128xf32>,
    %c3_50 = arith.constant 3 : index
    %c0_51 = arith.constant 0 : index
    %c0_52 = arith.constant 0 : index
    %110 = vector.load %arg6[%c3_50, %c0_51, %c0_52] : memref<4x2x128xf32, #tpu.memory_space<vmem>>, vector<1x2x128xf32>
    %111 = vector.shape_cast %110 : vector<1x2x128xf32> to vector<2x128xf32>
    %112 = arith.extui %101 : vector<2x128xi1> to vector<2x128xi32>
    %113 = arith.sitofp %112 : vector<2x128xi32> to vector<2x128xf32>
    %114 = arith.addf %99, %113 : vector<2x128xf32>
    %115 = arith.addf %111, %114 : vector<2x128xf32>
    %c3_53 = arith.constant 3 : index
    %c0_54 = arith.constant 0 : index
    %c0_55 = arith.constant 0 : index
    %116 = vector.load %arg6[%c3_53, %c0_54, %c0_55] : memref<4x2x128xf32, #tpu.memory_space<vmem>>, vector<1x2x128xf32>
    %117 = vector.shape_cast %116 : vector<1x2x128xf32> to vector<2x128xf32>
    %118 = vector.shape_cast %115 : vector<2x128xf32> to vector<1x2x128xf32>
    tpu.vector_store %arg6[%c3_53, %c0_54, %c0_55], %118 {strides = array<i32>} : memref<4x2x128xf32, #tpu.memory_space<vmem>>, vector<1x2x128xf32>,
    %c0_i32_56 = arith.constant 0 : i32
    %119 = arith.cmpi eq, %arg1, %c0_i32_56 : i32
    %120 = arith.extui %119 : i1 to i32
    %c0_i32_57 = arith.constant 0 : i32
    %121 = arith.cmpi ne, %120, %c0_i32_57 : i32
    scf.if %121 {
      %c0_58 = arith.constant 0 : index
      %c0_59 = arith.constant 0 : index
      %c0_60 = arith.constant 0 : index
      %122 = vector.load %arg5[%c0_58, %c0_59, %c0_60] : memref<4x2x128xf32, #tpu.memory_space<vmem>>, vector<4x2x128xf32>
      %cst_61 = arith.constant dense<0.000000e+00> : vector<4x2xf32>
      %123 = vector.multi_reduction <add>, %122, %cst_61 [2] : vector<4x2x128xf32> to vector<4x2xf32>
      %cst_62 = arith.constant dense<0.000000e+00> : vector<4xf32>
      %124 = vector.multi_reduction <add>, %123, %cst_62 [1] : vector<4x2xf32> to vector<4xf32>
      %125 = vector.shape_cast %124 : vector<4xf32> to vector<4x1xf32>
      %c0_63 = arith.constant 0 : index
      %c0_64 = arith.constant 0 : index
      %c0_65 = arith.constant 0 : index
      %126 = vector.load %arg6[%c0_63, %c0_64, %c0_65] : memref<4x2x128xf32, #tpu.memory_space<vmem>>, vector<4x2x128xf32>
      %cst_66 = arith.constant dense<0.000000e+00> : vector<4x2xf32>
      %127 = vector.multi_reduction <add>, %126, %cst_66 [2] : vector<4x2x128xf32> to vector<4x2xf32>
      %cst_67 = arith.constant dense<0.000000e+00> : vector<4xf32>
      %128 = vector.multi_reduction <add>, %127, %cst_67 [1] : vector<4x2xf32> to vector<4xf32>
      %129 = vector.shape_cast %128 : vector<4xf32> to vector<4x1xf32>
      %cst_68 = arith.constant 0.00999999977 : f32
      %130 = vector.broadcast %cst_68 : f32 to vector<4x1xf32>
      %131 = arith.addf %125, %130 : vector<4x1xf32>
      %cst_69 = arith.constant 0.00999999977 : f32
      %132 = vector.broadcast %cst_69 : f32 to vector<4x1xf32>
      %133 = arith.addf %129, %132 : vector<4x1xf32>
      %cst_70 = arith.constant 2.000000e+00 : f32
      %134 = vector.broadcast %cst_70 : f32 to vector<4x1xf32>
      %135 = arith.mulf %134, %131 : vector<4x1xf32>
      %136 = arith.divf %135, %133 : vector<4x1xf32>
      %cst_71 = arith.constant dense<0.000000e+00> : vector<1xf32>
      %137 = vector.multi_reduction <add>, %136, %cst_71 [0] : vector<4x1xf32> to vector<1xf32>
      %138 = vector.shape_cast %137 : vector<1xf32> to vector<1x1xf32>
      %c0_72 = arith.constant 0 : index
      %c0_73 = arith.constant 0 : index
      %c0_74 = arith.constant 0 : index
      %139 = vector.load %arg4[%c0_72, %c0_73, %c0_74] : memref<1x1x1xf32, #tpu.memory_space<vmem>>, vector<1x1x1xf32>
      %140 = vector.shape_cast %139 : vector<1x1x1xf32> to vector<1x1xf32>
      %141 = vector.shape_cast %138 : vector<1x1xf32> to vector<1x1x1xf32>
      tpu.vector_store %arg4[%c0_72, %c0_73, %c0_74], %141 {strides = array<i32>} : memref<1x1x1xf32, #tpu.memory_space<vmem>>, vector<1x1x1xf32>,
    } else {
    }
    return
  }
  func.func @transform_0(%arg0: i32, %arg1: i32) -> (i32, i32, i32, i32) {
    %c0_i32 = arith.constant 0 : i32
    %c0_i32_0 = arith.constant 0 : i32
    %c0_i32_1 = arith.constant 0 : i32
    return %arg0, %c0_i32, %arg1, %c0_i32_0 : i32, i32, i32, i32
  }
  func.func @transform_1(%arg0: i32, %arg1: i32) -> (i32, i32, i32) {
    %c0_i32 = arith.constant 0 : i32
    %c0_i32_0 = arith.constant 0 : i32
    return %arg0, %arg1, %c0_i32 : i32, i32, i32
  }
  func.func @transform_2(%arg0: i32, %arg1: i32) -> (i32, i32, i32) {
    %c0_i32 = arith.constant 0 : i32
    %c0_i32_0 = arith.constant 0 : i32
    %c0_i32_1 = arith.constant 0 : i32
    return %arg0, %c0_i32, %c0_i32_0 : i32, i32, i32
  }
}

</mosaic_0001>

<bundles_post_ra>
// kernel: dice_in_combined_loss.1
= control target key start
LH: loop header
LB: loop body
LE: loop exit
PB: predicated region body
PF: predicated region fallthrough
CT: control target
= control target key end

     0   :  { %s543_s9 = smov 0   ;;  %s545_s10 = smov 0   ;;  %s604_s0 = inlined_call_operand.vmem [shape: f32[2,4,2,128], index: 0, kind: input, shape index: {}]   ;;  %s605_s1 = inlined_call_operand.vmem [shape: s8[2,2,128], index: 1, kind: input, shape index: {}]   ;;  %s606_s2 = inlined_call_operand.vmem [shape: f32[2,1,1], index: 2, kind: output, shape index: {}]  }
   0x1   :  { %s547_s11 = smov 0  }
   0x2 LB: > { %s24_s12 = sadd.s32 1, %s521_s10  ;;  %p456_p0 = scmp.ge.s32.totalorder %s525_s11, 1  ;;  %s525_s11 = sphi %s547_s11, %s12_s11   ;;  %s521_s10 = sphi %s545_s10, %s608_s10   ;;  %s517_s9 = sphi %s543_s9, %s607_s9  }
   0x3   : > { %p26_p1 = scmp.ge.s32.totalorder %s24_s12, 2  ;;  %p142_p2 = scmp.lt.s32.totalorder %s525_s11, 3 }
   0x5   : > { %s610_s12 = smov (%p26_p1, %s24_s12), 0  ;;  %p143_p3 = pnand %p456_p0, %p142_p2 }
   0x6   : > { %p171_p4 = scmp.lt.s32.totalorder (!%p143_p3), %s517_s9, 1 }
   0x7   : > { %146 = sbr.rel (%p143_p3) target bundleno = 343 (0x157), region = 28 }
   0xc   : > { %v527_v0 = vmov 0.0   ;;  %s612_s9 = smov (!%p171_p4, %s517_s9), 1  ;;  %vm286_vm4 = vcmask 1041408   ;;  %vm309_vm5 = vcmask 1041409   ;;  %vm311_vm6 = vcmask 1042434  }
   0xd   : > { %196 = vst [vmem:[#allocation3] sm:$0x3] %v527_v0  ;;  %s465_s13 = sshll.u32 %s612_s9, 3  ;;  %s184_s19 = scalar_lea.vmem %s605_s1, %s612_s9  ;;  %vm313_vm7 = vcmask 1043459   ;;  %vm316_vm8 = vcmask 11264   ;;  %vm369_vm13 = vcmask 1043456  }
   0xe   : > { %192 = vst [vmem:[#allocation2] sm:$0x3] %v527_v0  ;;  %s178_s16 = scalar_lea.vmem %s604_s0, %s465_s13  ;;  %v204_v21 = vld [vmem:[%s184_s19] sm:$0x1]  ;;  %s187_s22 = scalar_lea.vmem %s606_s2, %s612_s9  ;;  %vm377_vm14 = vcmask 0  }
   0xf   : > { %193 = vst [vmem:[#allocation2 + $0x2] sm:$0x3] %v527_v0  ;;  %v200_v1 = vld [vmem:[%s178_s16] sm:$0x3]  ;;  %v201_v2 = vld [vmem:[%s178_s16 + $0x2] sm:$0x3]  ;;  %v205_v24 = vunpack.c.0.s8 %v204_v21 }
  0x10   : > { %194 = vst [vmem:[#allocation2 + $0x4] sm:$0x3] %v527_v0  ;;  %v202_v3 = vld [vmem:[%s178_s16 + $0x4] sm:$0x3]  ;;  %v206_v4 = vmax.f32 %v200_v1, %v201_v2  ;;  %v203_v5 = vld [vmem:[%s178_s16 + $0x6] sm:$0x3] }
  0x11   : > { %195 = vst [vmem:[#allocation2 + $0x6] sm:$0x3] %v527_v0  ;;  %vm226_vm0 = vcmp.eq.s32.totalorder %v205_v24, 0  ;;  %vm252_vm1 = vcmp.eq.s32.totalorder %v205_v24, 2  ;;  %vm238_vm2 = vcmp.eq.s32.totalorder %v205_v24, 1  ;;  %vm266_vm3 = vcmp.eq.s32.totalorder %v205_v24, 3 }
  0x12   : > { %197 = vst [vmem:[#allocation3 + $0x2] sm:$0x3] %v527_v0  ;;  %v207_v6 = vmax.f32 %v206_v4, %v202_v3  ;;  %v459_v26 = vsel %vm226_vm0, 1.0, %v527_v0  ;;  %v461_v27 = vsel %vm252_vm1, 1.0, %v527_v0  ;;  %v460_v28 = vsel %vm238_vm2, 1.0, %v527_v0 }
  0x13   : > { %198 = vst [vmem:[#allocation3 + $0x4] sm:$0x3] %v527_v0  ;;  %v462_v29 = vsel %vm266_vm3, 1.0, %v527_v0 }
  0x14   : > { %199 = vst [vmem:[#allocation3 + $0x6] sm:$0x3] %v527_v0  ;;  %v208_v7 = vmax.f32 %v207_v6, %v203_v5  ;;  %v231_v35 = vld [vmem:[#allocation3] sm:$0x3] }
  0x15   : > { %v227_v32 = vld [vmem:[#allocation2] sm:$0x3] }
  0x16   : > { %v209_v8 = vsub.f32 %v200_v1, %v208_v7  ;;  %v212_v9 = vsub.f32 %v201_v2, %v208_v7  ;;  %v215_v10 = vsub.f32 %v202_v3, %v208_v7  ;;  %v218_v11 = vsub.f32 %v203_v5, %v208_v7  ;;  %v240_v45 = vld [vmem:[#allocation2 + $0x2] sm:$0x3] }
  0x17   : > { %v254_v50 = vld [vmem:[#allocation2 + $0x4] sm:$0x3] }
  0x18   : > { %v210_v12 = vmul.f32 1.442695, %v209_v8  ;;  %v213_v13 = vmul.f32 1.442695, %v212_v9  ;;  %v216_v14 = vmul.f32 1.442695, %v215_v10 }
  0x19   : > { %v219_v15 = vmul.f32 1.442695, %v218_v11  ;;  %v245_v37 = vld [vmem:[#allocation3 + $0x2] sm:$0x3]  ;;  %v268_v53 = vld [vmem:[#allocation2 + $0x6] sm:$0x3] }
  0x1a   : > { %491 = vpow2.f32 %v210_v12  ;;  %v259_v36 = vld [vmem:[#allocation3 + $0x4] sm:$0x3]  ;;  %v303_v12 = vlaneseq }
  0x1b   : > { %493 = vpow2.f32 %v213_v13  ;;  %v273_v42 = vld [vmem:[#allocation3 + $0x6] sm:$0x3] }
  0x1c   : > { %495 = vpow2.f32 %v216_v14  ;;  %v304_v14 = vand.u32 127, %v303_v12 }
  0x1d   : > { %497 = vpow2.f32 %v219_v15 }
  0x20   : > { %v492_v16 = vpop.eup %491 }
  0x21   : > { %v494_v17 = vpop.eup %493 }
  0x22   : > { %v496_v18 = vpop.eup %495  ;;  %v221_v19 = vadd.f32 %v494_v17, %v492_v16 }
  0x23   : > { %v498_v20 = vpop.eup %497 }
  0x24   : > { %v222_v22 = vadd.f32 %v496_v18, %v221_v19 }
  0x26   : > { %v223_v23 = vadd.f32 %v498_v20, %v222_v22 }
  0x28   : > { %499 = vrcp.f32 %v223_v23 }
  0x2e   : > { %v500_v25 = vpop.eup %499 }
  0x2f   : > { %v225_v30 = vmul.f32 %v500_v25, %v492_v16  ;;  %v251_v31 = vmul.f32 %v500_v25, %v496_v18  ;;  %v237_v33 = vmul.f32 %v500_v25, %v494_v17  ;;  %v265_v34 = vmul.f32 %v500_v25, %v498_v20 }
  0x31   : > { %v234_v38 = vadd.f32 %v459_v26, %v225_v30  ;;  %v262_v39 = vadd.f32 %v461_v27, %v251_v31  ;;  %v228_v40 = vsel %vm226_vm0, %v225_v30, 0.0  ;;  %v248_v41 = vadd.f32 %v460_v28, %v237_v33 }
  0x32   : > { %v229_v43 = vadd.f32 %v228_v40, %v227_v32  ;;  %v276_v44 = vadd.f32 %v462_v29, %v265_v34  ;;  %v241_v46 = vsel %vm238_vm2, %v237_v33, 0.0  ;;  %v255_v51 = vsel %vm252_vm1, %v251_v31, 0.0 }
  0x33   : > { %v235_v47 = vadd.f32 %v234_v38, %v231_v35  ;;  %v263_v48 = vadd.f32 %v262_v39, %v259_v36  ;;  %v249_v49 = vadd.f32 %v248_v41, %v245_v37  ;;  %v269_v54 = vsel %vm266_vm3, %v265_v34, 0.0 }
  0x34   : > { %230 = vst [vmem:[#allocation2] sm:$0x3] %v229_v43  ;;  %v277_v52 = vadd.f32 %v276_v44, %v273_v42  ;;  %v242_v55 = vadd.f32 %v241_v46, %v240_v45  ;;  %v256_v56 = vadd.f32 %v255_v51, %v254_v50  ;;  %v270_v57 = vadd.f32 %v269_v54, %v268_v53 }
  0x35   : > { %236 = vst [vmem:[#allocation3] sm:$0x3] %v235_v47 }
  0x36   : > { %264 = vst [vmem:[#allocation3 + $0x4] sm:$0x3] %v263_v48 }
  0x37   : > { %250 = vst [vmem:[#allocation3 + $0x2] sm:$0x3] %v249_v49 }
  0x38   : > { %278 = vst [vmem:[#allocation3 + $0x6] sm:$0x3] %v277_v52 }
  0x39   : > { %243 = vst [vmem:[#allocation2 + $0x2] sm:$0x3] %v242_v55 }
  0x3a   : > { %257 = vst [vmem:[#allocation2 + $0x4] sm:$0x3] %v256_v56 }
  0x3b   : > { %v282_v58 = vld [vmem:[#allocation2] sm:$0x3]  ;;  %271 = vst [vmem:[#allocation2 + $0x6] sm:$0x3] %v270_v57 }
  0x3c   : > { %v320_v59 = vld [vmem:[#allocation3] sm:$0x3]  ;;  %v287_v60 = vsel %vm286_vm4, %v282_v58, 0.0 }
  0x3d   : > { %v324_v61 = vsel %vm286_vm4, %v320_v59, 0.0  ;;  %v322_v62 = vld [vmem:[#allocation3 + $0x4] sm:$0x3]  ;;  %288 = vadd.xlane.f32.xlu2 %v287_v60 }
  0x3e   : > { %325 = vadd.xlane.f32.xlu0 %v324_v61  ;;  %v330_v63 = vsel %vm286_vm4, %v322_v62, 0.0  ;;  %v321_v0 = vld [vmem:[#allocation3 + $0x2] sm:$0x3] }
  0x3f   : > { %331 = vadd.xlane.f32.xlu1 %v330_v63  ;;  %v323_v2 = vld [vmem:[#allocation3 + $0x6] sm:$0x3]  ;;  %v327_v4 = vsel %vm286_vm4, %v321_v0, 0.0 }
  0x40   : > { %v283_v1 = vld [vmem:[#allocation2 + $0x2] sm:$0x3]  ;;  %v333_v5 = vsel %vm286_vm4, %v323_v2, 0.0 }
  0x41   : > { %v290_v3 = vsel %vm286_vm4, %v283_v1, 0.0  ;;  %v284_v6 = vld [vmem:[#allocation2 + $0x4] sm:$0x3] }
  0x42   : > { %v285_v7 = vld [vmem:[#allocation2 + $0x6] sm:$0x3]  ;;  %v293_v8 = vsel %vm286_vm4, %v284_v6, 0.0 }
  0x43   : > { %v296_v9 = vsel %vm286_vm4, %v285_v7, 0.0 }
  0x45   : > { %291 = vadd.xlane.f32.xlu2 %v290_v3 }
  0x46   : > { %328 = vadd.xlane.f32.xlu0 %v327_v4 }
  0x47   : > { %334 = vadd.xlane.f32.xlu1 %v333_v5 }
  0x4e   : > { %294 = vadd.xlane.f32.xlu0 %v293_v8 }
  0x4f   : > { %297 = vadd.xlane.f32.xlu1 %v296_v9 }
  0xb0   : > { %v289_v10 = vpop.xlane.xlu2 %288 }
  0xb1   : > { %v326_v11 = vpop.xlane.xlu0 %325  ;;  %v305_v23 = vperm.slane %v289_v10, %v304_v14 }
  0xb2   : > { %v332_v13 = vpop.xlane.xlu1 %331  ;;  %v340_v16 = vperm.slane %v326_v11, %v304_v14 }
  0xb3   : > { %v342_v20 = vperm.slane %v332_v13, %v304_v14 }
  0xb8   : > { %v292_v19 = vpop.xlane.xlu2 %291 }
  0xb9   : > { %v329_v15 = vpop.xlane.xlu0 %328  ;;  %v306_v25 = vperm.slane %v292_v19, %v304_v14 }
  0xba   : > { %v341_v17 = vperm.slane %v329_v15, %v304_v14  ;;  %v335_v18 = vpop.xlane.xlu1 %334 }
  0xbb   : > { %v343_v21 = vperm.slane %v335_v18, %v304_v14  ;;  %v310_v28 = vsel %vm309_vm5, %v306_v25, %v305_v23 }
  0xbc   : > { %v344_v22 = vsel %vm309_vm5, %v341_v17, %v340_v16 }
  0xbd   : > { %v345_v24 = vsel %vm311_vm6, %v342_v20, %v344_v22 }
  0xbe   : > { %v346_v26 = vsel %vm313_vm7, %v343_v21, %v345_v24 }
  0xbf   : > { %v348_v27 = vsel %vm316_vm8, %v346_v26, 0.0 }
  0xc0   : > { %349 = vadd.xlane.f32.xlu2 %v348_v27 }
  0xc1   : > { %v295_v29 = vpop.xlane.xlu0 %294 }
  0xc2   : > { %v307_v30 = vperm.slane %v295_v29, %v304_v14  ;;  %v298_v31 = vpop.xlane.xlu1 %297 }
  0xc3   : > { %v308_v32 = vperm.slane %v298_v31, %v304_v14 }
  0xc4   : > { %v312_v33 = vsel %vm311_vm6, %v307_v30, %v310_v28 }
  0xc5   : > { %v314_v34 = vsel %vm313_vm7, %v308_v32, %v312_v33 }
  0xc6   : > { %v317_v35 = vsel %vm316_vm8, %v314_v34, 0.0 }
  0xc7   : > { %318 = vadd.xlane.f32.xlu0 %v317_v35 }
 0x133   : > { %v350_v36 = vpop.xlane.xlu2 %349 }
 0x134   : > { %v352_v37 = vadd.f32 0.01, %v350_v36 }
 0x136   : > { %501 = vrcp.f32 %v352_v37  ;;  %v365_v42 = vand.u32 2147483648, %v352_v37  ;;  %v363_v45 = vand.u32 2147483647, %v352_v37  ;;  %vm359_vm10 = vweird.f32 %v352_v37 }
 0x138   : > { %v366_v47 = vor.u32 1.1754944e-38, %v365_v42  ;;  %vm364_vm12 = vcmp.eq.f32.partialorder %v363_v45, 8.507059e+37 }
 0x13a   : > { %v319_v40 = vpop.xlane.xlu0 %318 }
 0x13b   : > { %v351_v43 = vadd.f32 0.01, %v319_v40 }
 0x13c   : > { %v502_v38 = vpop.eup %501 }
 0x13d   : > { %v355_v39 = vmul.f32 %v502_v38, %v352_v37  ;;  %vm360_vm9 = vweird.f32 %v502_v38  ;;  %v353_v48 = vmul.f32 2.0, %v351_v43 }
 0x13e   : > { %vm361_vm11 = vmor %vm359_vm10, %vm360_vm9 }
 0x13f   : > { %v356_v41 = vsub.f32 1.0, %v355_v39 }
 0x141   : > { %v357_v44 = vmul.f32 %v502_v38, %v356_v41 }
 0x143   : > { %v358_v46 = vadd.f32 %v502_v38, %v357_v44 }
 0x145   : > { %v362_v49 = vsel %vm361_vm11, %v502_v38, %v358_v46 }
 0x146   : > { %v367_v50 = vsel %vm364_vm12, %v366_v47, %v362_v49 }
 0x147   : > { %v368_v51 = vmul.f32 %v367_v50, %v353_v48 }
 0x149   : > { %v370_v52 = vsel %vm369_vm13, %v368_v51, 0.0 }
 0x14a   : > { %v371_v53 = vrot.slane %v370_v52, 4 }
 0x14c   : > { %v372_v54 = vadd.f32 %v371_v53, %v370_v52 }
 0x14e   : > { %v373_v55 = vrot.slane %v372_v54, 2 }
 0x150   : > { %v374_v56 = vadd.f32 %v373_v55, %v372_v54 }
 0x152   : > { %v375_v57 = vrot.slane %v374_v56, 1 }
 0x154   : > { %v376_v58 = vadd.f32 %v375_v57, %v374_v56 }
 0x156   : > { %378 = vst.msk [vmem:[%s187_s22] sm:$0x1] %vm377_vm14, %v376_v58 }
 0x157 PF: > { %s12_s11 = sadd.s32 1, %s525_s11   ;;  %s607_s9 = smov %s521_s10 }
 0x158   : > { %p9_p5 = scmp.ge.s32.totalorder %s12_s11, 4   ;;  %s608_s10 = smov %s610_s12 }
 0x15a   :  { %11 = sbr.rel (!%p9_p5) target bundleno = 2 (0x2), region = 75 }

</bundles_post_ra>
